<compile_context>
chip_gen: v7x
topology: tpu7x:2x2x1
jax: 0.10.0
libtpu: 0.0.40
codegen_flags: <defaults>
</compile_context>

<pallas_src>
import functools

import jax
import jax.numpy as jnp
from jax.experimental import pallas as pl
from jax.experimental.pallas import tpu as pltpu


HIDDEN = 64             # per-head hidden width in the PyTorch module
HID_FUSED = 2 * HIDDEN  # fused hidden width (128 -> one full vreg lane dim)


def _round_up(x, m):
    return (x + m - 1) // m * m


# --------------------------------------------------------------------------
# Kernel: one fused 3-matmul MLP over a (tb, obs_dim) batch tile.
# --------------------------------------------------------------------------
def a2c_fused_kernel(x_ref, w1_ref, b1_ref, w2_ref, b2_ref, w3_ref, b3_ref,
                     act_ref, val_ref, *, action_dim):
    wdt = w1_ref.dtype  # f32 or bf16; dots always accumulate in f32

    x = x_ref[...].astype(wdt)
    h = jnp.dot(x, w1_ref[...], preferred_element_type=jnp.float32) + b1_ref[...]
    h = jnp.maximum(h, 0.0)                                   # f32 ReLU
    h = jnp.dot(h.astype(wdt), w2_ref[...],
                preferred_element_type=jnp.float32) + b2_ref[...]
    h = jnp.maximum(h, 0.0)
    out = jnp.dot(h.astype(wdt), w3_ref[...],
                  preferred_element_type=jnp.float32) + b3_ref[...]

    # Two narrow stores (masked vst cost sits in a store slot with huge slack);
    # avoids any wide padded output slab + wrapper-side slicing passes.
    act_ref[...] = out[:, :action_dim].astype(act_ref.dtype)
    val_ref[...] = out[:, action_dim:action_dim + 1].astype(val_ref.dtype)


# --------------------------------------------------------------------------
# One-time param packing (wrapper-side, never inside the kernel).
# --------------------------------------------------------------------------
def pack_params(p, action_dim, *, dtype=jnp.float32):
    """Fuse policy/value heads into one 128-wide MLP.

    dtype=jnp.bfloat16 enables bf16-in / f32-accumulate MXU dots (faster, but
    relaxes exact-fp32 parity with the PyTorch reference).  Biases stay f32.
    """
    out_w = max(8, _round_up(action_dim + 1, 8))

    w1 = jnp.concatenate([p["pw1"], p["vw1"]], axis=1).astype(dtype)  # (obs,128)
    b1 = jnp.concatenate([p["pb1"], p["vb1"]], axis=1)                # (1,128) f32

    w2 = jnp.zeros((HID_FUSED, HID_FUSED), jnp.float32)
    w2 = w2.at[:HIDDEN, :HIDDEN].set(p["pw2"])
    w2 = w2.at[HIDDEN:, HIDDEN:].set(p["vw2"]).astype(dtype)          # (128,128)
    b2 = jnp.concatenate([p["pb2"], p["vb2"]], axis=1)                # (1,128) f32

    w3 = jnp.zeros((HID_FUSED, out_w), jnp.float32)
    w3 = w3.at[:HIDDEN, :action_dim].set(p["pw3"])
    w3 = w3.at[HIDDEN:, action_dim:action_dim + 1].set(p["vw3"]).astype(dtype)
    b3 = jnp.zeros((1, out_w), jnp.float32)
    b3 = b3.at[:, :action_dim].set(p["pb3"])
    b3 = b3.at[:, action_dim:action_dim + 1].set(p["vb3"])            # (1,out_w) f32

    return dict(w1=w1, b1=b1, w2=w2, b2=b2, w3=w3, b3=b3)


# --------------------------------------------------------------------------
# Batch-tile selection.
# --------------------------------------------------------------------------
def _pick_tile(batch, tb_max):
    """Rows per grid step: a multiple of 8 (or the full batch when tiny),
    capped at tb_max, and split into >=2 (even when possible) tiles for large
    batches so v7x's two TensorCores both get work on the "parallel" axis."""
    if batch <= tb_max:
        if batch >= 1024:  # large single-tile batch: split in two for v7x
            return _round_up(pl.cdiv(batch, 2), 8)
        return batch       # single block == full batch dim (always legal)
    n_tiles = pl.cdiv(batch, tb_max)
    if n_tiles % 2:
        n_tiles += 1       # even tile count -> balanced across 2 TCs
    return min(_round_up(pl.cdiv(batch, n_tiles), 8), _round_up(tb_max, 8))


# --------------------------------------------------------------------------
# Wrapper: batch-tiled pallas_call with resident weights, narrow outputs.
# --------------------------------------------------------------------------
@functools.partial(jax.jit, static_argnames=("action_dim", "tb"))
def a2c_forward(x, packed, *, action_dim, tb=4096):
    """x: (batch, obs_dim) f32.  packed: dict from pack_params.

    Returns (action_logits (batch, action_dim) f32, value (batch, 1) f32)."""
    batch, obs_dim = x.shape
    out_w = packed["w3"].shape[1]
    # Layout of the fused w3/b3 is action_dim-dependent: fail loudly on mismatch.
    assert packed["w1"].shape == (obs_dim, HID_FUSED)
    assert packed["w2"].shape == (HID_FUSED, HID_FUSED)
    assert packed["w3"].shape[0] == HID_FUSED and out_w >= action_dim + 1

    tb_eff = _pick_tile(batch, tb)
    grid = (pl.cdiv(batch, tb_eff),)   # ragged final block handled by Pallas

    # Advisory cost estimate for XLA scheduling inside a larger rollout jit.
    wbytes = packed["w1"].dtype.itemsize
    flops = 2 * batch * (obs_dim * HID_FUSED + HID_FUSED * HID_FUSED
                         + HID_FUSED * out_w)
    weight_bytes = (wbytes * (obs_dim * HID_FUSED + HID_FUSED * HID_FUSED
                              + HID_FUSED * out_w)
                    + 4 * (2 * HID_FUSED + out_w))
    bytes_accessed = (4 * batch * obs_dim + weight_bytes
                      + 4 * batch * (action_dim + 1))

    resident = lambda i: (0, 0)   # fused weights/biases stay put across tiles
    moving = lambda i: (i, 0)     # x / outputs advance with the grid

    action, value = pl.pallas_call(
        functools.partial(a2c_fused_kernel, action_dim=action_dim),
        out_shape=(jax.ShapeDtypeStruct((batch, action_dim), jnp.float32),
                   jax.ShapeDtypeStruct((batch, 1), jnp.float32)),
        grid_spec=pltpu.PrefetchScalarGridSpec(
            num_scalar_prefetch=0,
            grid=grid,
            in_specs=[
                pl.BlockSpec((tb_eff, obs_dim), moving),
                pl.BlockSpec((obs_dim, HID_FUSED), resident),
                pl.BlockSpec((1, HID_FUSED), resident),
                pl.BlockSpec((HID_FUSED, HID_FUSED), resident),
                pl.BlockSpec((1, HID_FUSED), resident),
                pl.BlockSpec((HID_FUSED, out_w), resident),
                pl.BlockSpec((1, out_w), resident),
            ],
            out_specs=[
                pl.BlockSpec((tb_eff, action_dim), moving),
                pl.BlockSpec((tb_eff, 1), moving),
            ],
        ),
        compiler_params=pltpu.CompilerParams(
            dimension_semantics=("parallel",)),   # shard tiles across v7x's 2 TCs
        cost_estimate=pl.CostEstimate(
            flops=flops, transcendentals=0, bytes_accessed=bytes_accessed),
    )(x, packed["w1"], packed["b1"], packed["w2"], packed["b2"],
      packed["w3"], packed["b3"])

    return action, value


# --------------------------------------------------------------------------
# Init + pure-JAX reference (matches PyTorch forward semantics).
# --------------------------------------------------------------------------
def init_params(key, obs_dim, action_dim, hidden=HIDDEN):
    """PyTorch-style uniform fan-in init; weights stored as (in, out)."""
    def linear(k, fan_in, fan_out):
        kw, kb = jax.random.split(k)
        bound = 1.0 / jnp.sqrt(fan_in)
        w = jax.random.uniform(kw, (fan_in, fan_out), jnp.float32, -bound, bound)
        b = jax.random.uniform(kb, (1, fan_out), jnp.float32, -bound, bound)
        return w, b

    keys = jax.random.split(key, 6)
    pw1, pb1 = linear(keys[0], obs_dim, hidden)
    pw2, pb2 = linear(keys[1], hidden, hidden)
    pw3, pb3 = linear(keys[2], hidden, action_dim)
    vw1, vb1 = linear(keys[3], obs_dim, hidden)
    vw2, vb2 = linear(keys[4], hidden, hidden)
    vw3, vb3 = linear(keys[5], hidden, 1)
    return dict(pw1=pw1, pb1=pb1, pw2=pw2, pb2=pb2, pw3=pw3, pb3=pb3,
                vw1=vw1, vb1=vb1, vw2=vw2, vb2=vb2, vw3=vw3, vb3=vb3)


def a2c_reference(x, p):
    h = jnp.maximum(x @ p["pw1"] + p["pb1"], 0.0)
    h = jnp.maximum(h @ p["pw2"] + p["pb2"], 0.0)
    action = h @ p["pw3"] + p["pb3"]
    g = jnp.maximum(x @ p["vw1"] + p["vb1"], 0.0)
    g = jnp.maximum(g @ p["vw2"] + p["vb2"], 0.0)
    value = g @ p["vw3"] + p["vb3"]
    return action, value


# --------------------------------------------------------------------------
if __name__ == "__main__":
    obs_dim, action_dim = 16, 4

    key = jax.random.PRNGKey(0)
    kx, kp = jax.random.split(key)
    params = init_params(kp, obs_dim, action_dim)
    packed_f32 = pack_params(params, action_dim)                      # exact path
    packed_bf16 = pack_params(params, action_dim, dtype=jnp.bfloat16) # fast path

    # Case 1: tiny batch (single tile, exercises the fused-head path).
    x8 = jax.random.normal(kx, (8, obs_dim), jnp.float32)
    a8, v8 = a2c_forward(x8, packed_f32, action_dim=action_dim)
    a8, v8 = jax.block_until_ready(a8), jax.block_until_ready(v8)
    ra, rv = a2c_reference(x8, params)
    assert a8.shape == (8, action_dim) and v8.shape == (8, 1)
    assert jnp.allclose(a8, ra, atol=1e-5, rtol=1e-5)
    assert jnp.allclose(v8, rv, atol=1e-5, rtol=1e-5)

    # Case 2: multi-tile grid (grid=3) with resident weights.
    x48 = jax.random.normal(jax.random.fold_in(kx, 1), (48, obs_dim), jnp.float32)
    a48, v48 = a2c_forward(x48, packed_f32, action_dim=action_dim, tb=16)
    a48, v48 = jax.block_until_ready(a48), jax.block_until_ready(v48)
    ra, rv = a2c_reference(x48, params)
    assert jnp.allclose(a48, ra, atol=1e-5, rtol=1e-5)
    assert jnp.allclose(v48, rv, atol=1e-5, rtol=1e-5)

    # Case 3: ragged batch (no jnp.pad; full-batch block, nothing sliced off).
    x10 = jax.random.normal(jax.random.fold_in(kx, 2), (10, obs_dim), jnp.float32)
    a10, v10 = a2c_forward(x10, packed_f32, action_dim=action_dim)
    a10, v10 = jax.block_until_ready(a10), jax.block_until_ready(v10)
    ra, rv = a2c_reference(x10, params)
    assert a10.shape == (10, action_dim) and v10.shape == (10, 1)
    assert jnp.allclose(a10, ra, atol=1e-5, rtol=1e-5)
    assert jnp.allclose(v10, rv, atol=1e-5, rtol=1e-5)

    # Case 4: large rollout batch, bf16 weights (f32 accumulation); tile auto-
    # splits into 2 grid steps so both v7x TensorCores get work.
    xL = jax.random.normal(jax.random.fold_in(kx, 3), (2048, obs_dim), jnp.float32)
    aL, vL = a2c_forward(xL, packed_bf16, action_dim=action_dim)
    aL, vL = jax.block_until_ready(aL), jax.block_until_ready(vL)
    ra, rv = a2c_reference(xL, params)
    assert aL.shape == (2048, action_dim) and vL.shape == (2048, 1)
    assert jnp.allclose(aL, ra, atol=5e-2, rtol=5e-2)   # bf16 weights: looser tol
    assert jnp.allclose(vL, rv, atol=5e-2, rtol=5e-2)

    # TODO(synk): if multiple A2C ensembles run per step, co-pack their heads to
    # widen the fused hidden toward 256 lanes for better v6e/v7x MXU occupancy.
    print("KERNEL_OK")
</pallas_src>

<mosaic_0001>
module attributes {stable_mosaic.version = 11 : i64} {
  func.func @a2c_fused_kernel(%arg0: i32, %arg1: memref<8x16xf32, #tpu.memory_space<vmem>>, %arg2: memref<16x128xf32, #tpu.memory_space<vmem>>, %arg3: memref<1x128xf32, #tpu.memory_space<vmem>>, %arg4: memref<128x128xf32, #tpu.memory_space<vmem>>, %arg5: memref<1x128xf32, #tpu.memory_space<vmem>>, %arg6: memref<128x8xf32, #tpu.memory_space<vmem>>, %arg7: memref<1x8xf32, #tpu.memory_space<vmem>>, %arg8: memref<8x4xf32, #tpu.memory_space<vmem>>, %arg9: memref<8x1xf32, #tpu.memory_space<vmem>>) attributes {dimension_semantics = [#tpu.dimension_semantics<parallel>], iteration_bounds = array<i64: 1>, scalar_prefetch = 0 : i64, scratch_operands = 0 : i64, tpu.core_type = #tpu.core_type<tc>, window_params = [{transform_indices = @transform_0, window_bounds = array<i64: 8, 16>}, {pipeline_mode = #tpu.pipeline_mode<synchronous>, transform_indices = @transform_1, window_bounds = array<i64: 16, 128>}, {pipeline_mode = #tpu.pipeline_mode<synchronous>, transform_indices = @transform_2, window_bounds = array<i64: 1, 128>}, {pipeline_mode = #tpu.pipeline_mode<synchronous>, transform_indices = @transform_3, window_bounds = array<i64: 128, 128>}, {pipeline_mode = #tpu.pipeline_mode<synchronous>, transform_indices = @transform_4, window_bounds = array<i64: 1, 128>}, {pipeline_mode = #tpu.pipeline_mode<synchronous>, transform_indices = @transform_5, window_bounds = array<i64: 128, 8>}, {pipeline_mode = #tpu.pipeline_mode<synchronous>, transform_indices = @transform_6, window_bounds = array<i64: 1, 8>}, {transform_indices = @transform_7, window_bounds = array<i64: 8, 4>}, {transform_indices = @transform_8, window_bounds = array<i64: 8, 1>}]} {
    %c0 = arith.constant 0 : index
    %c0_0 = arith.constant 0 : index
    %0 = vector.load %arg1[%c0, %c0_0] : memref<8x16xf32, #tpu.memory_space<vmem>>, vector<8x16xf32>
    %c0_1 = arith.constant 0 : index
    %c0_2 = arith.constant 0 : index
    %1 = vector.load %arg2[%c0_1, %c0_2] : memref<16x128xf32, #tpu.memory_space<vmem>>, vector<16x128xf32>
    %cst = arith.constant dense<0.000000e+00> : vector<8x128xf32>
    %2 = tpu.matmul %0, %1, %cst {dimension_numbers = #tpu.dot_dimension_numbers<[1], [0], [0], [1], [0, 0, 1, 1], [], []>} : vector<8x16xf32>, vector<16x128xf32>, vector<8x128xf32> -> vector<8x128xf32>
    %c0_3 = arith.constant 0 : index
    %c0_4 = arith.constant 0 : index
    %3 = vector.load %arg3[%c0_3, %c0_4] : memref<1x128xf32, #tpu.memory_space<vmem>>, vector<1x128xf32>
    %4 = vector.broadcast %3 : vector<1x128xf32> to vector<8x128xf32>
    %5 = arith.addf %2, %4 : vector<8x128xf32>
    %cst_5 = arith.constant 0.000000e+00 : f32
    %6 = vector.broadcast %cst_5 : f32 to vector<8x128xf32>
    %7 = arith.maximumf %5, %6 : vector<8x128xf32>
    %c0_6 = arith.constant 0 : index
    %c0_7 = arith.constant 0 : index
    %8 = vector.load %arg4[%c0_6, %c0_7] : memref<128x128xf32, #tpu.memory_space<vmem>>, vector<128x128xf32>
    %cst_8 = arith.constant dense<0.000000e+00> : vector<8x128xf32>
    %9 = tpu.matmul %7, %8, %cst_8 {dimension_numbers = #tpu.dot_dimension_numbers<[1], [0], [0], [1], [0, 0, 1, 1], [], []>} : vector<8x128xf32>, vector<128x128xf32>, vector<8x128xf32> -> vector<8x128xf32>
    %c0_9 = arith.constant 0 : index
    %c0_10 = arith.constant 0 : index
    %10 = vector.load %arg5[%c0_9, %c0_10] : memref<1x128xf32, #tpu.memory_space<vmem>>, vector<1x128xf32>
    %11 = vector.broadcast %10 : vector<1x128xf32> to vector<8x128xf32>
    %12 = arith.addf %9, %11 : vector<8x128xf32>
    %cst_11 = arith.constant 0.000000e+00 : f32
    %13 = vector.broadcast %cst_11 : f32 to vector<8x128xf32>
    %14 = arith.maximumf %12, %13 : vector<8x128xf32>
    %c0_12 = arith.constant 0 : index
    %c0_13 = arith.constant 0 : index
    %15 = vector.load %arg6[%c0_12, %c0_13] : memref<128x8xf32, #tpu.memory_space<vmem>>, vector<128x8xf32>
    %cst_14 = arith.constant dense<0.000000e+00> : vector<8x8xf32>
    %16 = tpu.matmul %14, %15, %cst_14 {dimension_numbers = #tpu.dot_dimension_numbers<[1], [0], [0], [1], [0, 0, 1, 1], [], []>} : vector<8x128xf32>, vector<128x8xf32>, vector<8x8xf32> -> vector<8x8xf32>
    %c0_15 = arith.constant 0 : index
    %c0_16 = arith.constant 0 : index
    %17 = vector.load %arg7[%c0_15, %c0_16] : memref<1x8xf32, #tpu.memory_space<vmem>>, vector<1x8xf32>
    %18 = vector.broadcast %17 : vector<1x8xf32> to vector<8x8xf32>
    %19 = arith.addf %16, %18 : vector<8x8xf32>
    %20 = vector.extract_strided_slice %19 {offsets = [0, 0], sizes = [8, 4], strides = [1, 1]} : vector<8x8xf32> to vector<8x4xf32>
    %c0_17 = arith.constant 0 : index
    %c0_18 = arith.constant 0 : index
    %21 = vector.load %arg8[%c0_17, %c0_18] : memref<8x4xf32, #tpu.memory_space<vmem>>, vector<8x4xf32>
    tpu.vector_store %arg8[%c0_17, %c0_18], %20 {strides = array<i32>} : memref<8x4xf32, #tpu.memory_space<vmem>>, vector<8x4xf32>,
    %22 = vector.extract_strided_slice %19 {offsets = [0, 4], sizes = [8, 1], strides = [1, 1]} : vector<8x8xf32> to vector<8x1xf32>
    %c0_19 = arith.constant 0 : index
    %c0_20 = arith.constant 0 : index
    %23 = vector.load %arg9[%c0_19, %c0_20] : memref<8x1xf32, #tpu.memory_space<vmem>>, vector<8x1xf32>
    tpu.vector_store %arg9[%c0_19, %c0_20], %22 {strides = array<i32>} : memref<8x1xf32, #tpu.memory_space<vmem>>, vector<8x1xf32>,
    return
  }
  func.func @transform_0(%arg0: i32) -> (i32, i32) {
    %c0_i32 = arith.constant 0 : i32
    %c0_i32_0 = arith.constant 0 : i32
    return %arg0, %c0_i32 : i32, i32
  }
  func.func @transform_1(%arg0: i32) -> (i32, i32) {
    %c0_i32 = arith.constant 0 : i32
    %c0_i32_0 = arith.constant 0 : i32
    %c0_i32_1 = arith.constant 0 : i32
    return %c0_i32, %c0_i32_0 : i32, i32
  }
  func.func @transform_2(%arg0: i32) -> (i32, i32) {
    %c0_i32 = arith.constant 0 : i32
    %c0_i32_0 = arith.constant 0 : i32
    %c0_i32_1 = arith.constant 0 : i32
    return %c0_i32, %c0_i32_0 : i32, i32
  }
  func.func @transform_3(%arg0: i32) -> (i32, i32) {
    %c0_i32 = arith.constant 0 : i32
    %c0_i32_0 = arith.constant 0 : i32
    %c0_i32_1 = arith.constant 0 : i32
    return %c0_i32, %c0_i32_0 : i32, i32
  }
  func.func @transform_4(%arg0: i32) -> (i32, i32) {
    %c0_i32 = arith.constant 0 : i32
    %c0_i32_0 = arith.constant 0 : i32
    %c0_i32_1 = arith.constant 0 : i32
    return %c0_i32, %c0_i32_0 : i32, i32
  }
  func.func @transform_5(%arg0: i32) -> (i32, i32) {
    %c0_i32 = arith.constant 0 : i32
    %c0_i32_0 = arith.constant 0 : i32
    %c0_i32_1 = arith.constant 0 : i32
    return %c0_i32, %c0_i32_0 : i32, i32
  }
  func.func @transform_6(%arg0: i32) -> (i32, i32) {
    %c0_i32 = arith.constant 0 : i32
    %c0_i32_0 = arith.constant 0 : i32
    %c0_i32_1 = arith.constant 0 : i32
    return %c0_i32, %c0_i32_0 : i32, i32
  }
  func.func @transform_7(%arg0: i32) -> (i32, i32) {
    %c0_i32 = arith.constant 0 : i32
    %c0_i32_0 = arith.constant 0 : i32
    return %arg0, %c0_i32 : i32, i32
  }
  func.func @transform_8(%arg0: i32) -> (i32, i32) {
    %c0_i32 = arith.constant 0 : i32
    %c0_i32_0 = arith.constant 0 : i32
    return %arg0, %c0_i32 : i32, i32
  }
}

</mosaic_0001>

<bundles_post_ra>
// kernel: a2c_forward.1
= control target key start
LH: loop header
LB: loop body
LE: loop exit
PB: predicated region body
PF: predicated region fallthrough
CT: control target
= control target key end

     0   :  { %14 = vsyncpa [#allocation3], 0  ;;  %s527_s27 = smov [#allocation2]   ;;  %s726_s0 = inlined_call_operand.hbm [shape: f32[8,16], index: 0, kind: input, shape index: {}]   ;;  %s727_s1 = inlined_call_operand.vmem [shape: f32[16,128], index: 1, kind: input, shape index: {}]   ;;  %s728_s2 = inlined_call_operand.vmem [shape: f32[1,128], index: 2, kind: input, shape index: {}]   ;;  %s729_s3 = inlined_call_operand.vmem [shape: f32[128,128], index: 3, kind: input, shape index: {}]   ;;  %s730_s4 = inlined_call_operand.vmem [shape: f32[1,128], index: 4, kind: input, shape index: {}]   ;;  %s731_s5 = inlined_call_operand.vmem [shape: f32[128,8], index: 5, kind: input, shape index: {}]   ;;  %s732_s6 = inlined_call_operand.vmem [shape: f32[1,8], index: 6, kind: input, shape index: {}]   ;;  %s733_s7 = inlined_call_operand.vmem [shape: f32[8,4], index: 7, kind: output, shape index: {0}]   ;;  %s734_s8 = inlined_call_operand.vmem [shape: f32[8,1], index: 8, kind: output, shape index: {1}]  }
   0x1   :  { %s21_s28 = sshll.u32 %s527_s27, 4  ;;  %s503_s9 = scalar_lea.hbm %s726_s0, 128  ;;  %s22_s28 = int_to_ptr.vmem [resolvable:$true] %s21_s28 }
   0x2   :  { %p504_p0 = scmp.ne.s32.totalorder %s726_s0, %s503_s9  ;;  %p507_p1 = scmp.lt.u32.totalorder %s503_s9, %s726_s0 }
   0x4   :  { %p509_p2 = pnand %p507_p1, %p504_p0 }
   0x6   :  { %512 = shalt.err (!%p509_p2)
}
   0x7   :  { %s513_s14 = scalar_lea.vmem %s22_s28, 128  ;;  %p518_p4 = scmp.lt.s32.totalorder %s22_s28, %s22_s28 }
   0x8   :  { %p514_p3 = scmp.ne.s32.totalorder %s22_s28, %s513_s14  ;;  %p519_p5 = scmp.lt.s32.totalorder %s513_s14, %s513_s14 }
   0xa   :  { %p520_p6 = por %p519_p5, %p518_p4 }
   0xc   :  { %p521_p7 = pnand %p520_p6, %p514_p3 }
   0xe   :  { %524 = shalt.err (!%p521_p7)
}
   0xf   :  { %24 = dma.hbm_to_vmem [thread:$0]  %s726_s0, 128, %s22_s28, [#allocation3]  }
  0x10   :  { %525 = dma.done.wait [#allocation3], 128  }
  0x11   :  { %526 = vsyncadd [#allocation3], 4294967168  ;;  %v528_v0 = vmov 0.0|0.0   ;;  %vm529_vm0 = vmmov 0   ;;  %v530_v1 = vmov 0.0   ;;  %v41_v2 = vld [vmem:[%s727_s1] sm:$0xff] }
  0x12   :  { %447 = vmatprep.subr.bf16.mxu0 %v528_v0  ;;  %374 = vmatprep.mubr.msk.f32.mxu0 %vm529_vm0, %v530_v1  ;;  %v42_v3 = vld [vmem:[%s727_s1 + $0x8] sm:$0xff]  ;;  %v125_v5 = vld [vmem:[%s729_s3] sm:$0xff]  ;;  %v127_v7 = vld [vmem:[%s729_s3 + $0x10] sm:$0xff]  ;;  %vm50_vm1 = vcmask 130048   ;;  %vm312_vm2 = vcmask 31744   ;;  %s531_s17 = smov 124  }
  0x13   :  { %450 = vmatprep.subr.bf16.mxu1 %v528_v0  ;;  %409 = vmatprep.mubr.msk.f32.mxu1 %vm529_vm0, %v530_v1  ;;  %v448_v4 = vpack.c.bf16 %v42_v3, %v41_v2  ;;  %v126_v6 = vld [vmem:[%s729_s3 + $0x8] sm:$0xff]  ;;  %v128_v9 = vld [vmem:[%s729_s3 + $0x18] sm:$0xff]  ;;  %v40_v10 = vld [vmem:[#allocation2] sm:$0xff]  ;;  %vm318_vm3 = vcmask 7168  }
  0x14   :  { %v451_v8 = vpack.c.bf16 %v126_v6, %v125_v5  ;;  %v454_v11 = vpack.c.bf16 %v128_v9, %v127_v7  ;;  %v129_v12 = vld [vmem:[%s729_s3 + $0x20] sm:$0xff]  ;;  %v130_v13 = vld [vmem:[%s729_s3 + $0x28] sm:$0xff]  ;;  %v131_v15 = vld [vmem:[%s729_s3 + $0x30] sm:$0xff] }
  0x15   :  { %449 = vmatpush3.bf16.msra.mxu0 %v448_v4  ;;  %v457_v14 = vpack.c.bf16 %v130_v13, %v129_v12  ;;  %v132_v16 = vld [vmem:[%s729_s3 + $0x38] sm:$0xff]  ;;  %v133_v18 = vld [vmem:[%s729_s3 + $0x40] sm:$0xff]  ;;  %v134_v19 = vld [vmem:[%s729_s3 + $0x48] sm:$0xff] }
  0x16   :  { %452 = vmatpush3.bf16.msra.mxu1 %v451_v8  ;;  %474 = vmatprep.subr.bf16.mxu0 %v528_v0  ;;  %v460_v17 = vpack.c.bf16 %v132_v16, %v131_v15  ;;  %v463_v20 = vpack.c.bf16 %v134_v19, %v133_v18  ;;  %v135_v21 = vld [vmem:[%s729_s3 + $0x50] sm:$0xff]  ;;  %v136_v22 = vld [vmem:[%s729_s3 + $0x58] sm:$0xff]  ;;  %v137_v24 = vld [vmem:[%s729_s3 + $0x60] sm:$0xff] }
  0x17   :  { %453 = vmatprep.subr.bf16.mxu1 %v528_v0  ;;  %v466_v23 = vpack.c.bf16 %v136_v22, %v135_v21  ;;  %v138_v25 = vld [vmem:[%s729_s3 + $0x68] sm:$0xff]  ;;  %v139_v27 = vld [vmem:[%s729_s3 + $0x70] sm:$0xff]  ;;  %v140_v28 = vld [vmem:[%s729_s3 + $0x78] sm:$0xff] }
  0x18   :  { %375 = vmatmul.mubr.msk.f32.vlgmr.msra.gmra.mrb[0].mxu0 %vm50_vm1, %v40_v10  ;;  %v469_v26 = vpack.c.bf16 %v138_v25, %v137_v24  ;;  %v472_v29 = vpack.c.bf16 %v140_v28, %v139_v27  ;;  %v219_v30 = vld [vmem:[%s731_s5] sm:$0xff]  ;;  %v220_v31 = vld [vmem:[%s731_s5 + $0x8] sm:$0xff]  ;;  %v221_v32 = vld [vmem:[%s731_s5 + $0x10] sm:$0xff] }
  0x19   :  { %444 = vmatprep.mubr.msk.f32.mxu0 %vm529_vm0, %v530_v1  ;;  %v475_v33 = vpack.c.bf16 %v220_v31, %v219_v30  ;;  %v222_v34 = vld [vmem:[%s731_s5 + $0x18] sm:$0xff]  ;;  %v223_v36 = vld [vmem:[%s731_s5 + $0x20] sm:$0xff]  ;;  %v224_v37 = vld [vmem:[%s731_s5 + $0x28] sm:$0xff] }
  0x1a   :  { %455 = vmatpush3.bf16.msra.mxu1 %v454_v11  ;;  %v478_v35 = vpack.c.bf16 %v222_v34, %v221_v32  ;;  %v481_v38 = vpack.c.bf16 %v224_v37, %v223_v36  ;;  %v225_v39 = vld [vmem:[%s731_s5 + $0x30] sm:$0xff]  ;;  %v226_v40 = vld [vmem:[%s731_s5 + $0x38] sm:$0xff]  ;;  %v227_v42 = vld [vmem:[%s731_s5 + $0x40] sm:$0xff] }
  0x1b   :  { %456 = vmatprep.subr.bf16.mxu1 %v528_v0  ;;  %476 = vmatpush3.bf16.msra.mxu0 %v475_v33  ;;  %v484_v41 = vpack.c.bf16 %v226_v40, %v225_v39  ;;  %v228_v43 = vld [vmem:[%s731_s5 + $0x48] sm:$0xff]  ;;  %v229_v45 = vld [vmem:[%s731_s5 + $0x50] sm:$0xff]  ;;  %v230_v46 = vld [vmem:[%s731_s5 + $0x58] sm:$0xff] }
  0x1c   :  { %477 = vmatprep.subr.bf16.mxu0 %v528_v0  ;;  %v487_v44 = vpack.c.bf16 %v228_v43, %v227_v42  ;;  %v490_v47 = vpack.c.bf16 %v230_v46, %v229_v45  ;;  %v231_v48 = vld [vmem:[%s731_s5 + $0x60] sm:$0xff]  ;;  %v232_v49 = vld [vmem:[%s731_s5 + $0x68] sm:$0xff]  ;;  %v233_v56 = vld [vmem:[%s731_s5 + $0x70] sm:$0xff] }
  0x1d   :  { %v493_v50 = vpack.c.bf16 %v232_v49, %v231_v48  ;;  %v329_v51 = vld [vmem:[%s728_s2] ss:$0 sm:$0xff]  ;;  %v234_v57 = vld [vmem:[%s731_s5 + $0x78] sm:$0xff] }
  0x1e   :  { %458 = vmatpush3.bf16.msra.mxu1 %v457_v14  ;;  %v496_v58 = vpack.c.bf16 %v234_v57, %v233_v56  ;;  %v331_v59 = vld [vmem:[%s730_s4] ss:$0 sm:$0xff] }
  0x1f   :  { %459 = vmatprep.subr.bf16.mxu1 %v528_v0  ;;  %479 = vmatpush3.bf16.msra.mxu0 %v478_v35 }
  0x20   :  { %480 = vmatprep.subr.bf16.mxu0 %v528_v0 }
  0x22   :  { %461 = vmatpush3.bf16.msra.mxu1 %v460_v17 }
  0x23   :  { %462 = vmatprep.subr.bf16.mxu1 %v528_v0  ;;  %482 = vmatpush3.bf16.msra.mxu0 %v481_v38 }
  0x24   :  { %483 = vmatprep.subr.bf16.mxu0 %v528_v0 }
  0x26   :  { %464 = vmatpush3.bf16.msra.mxu1 %v463_v20 }
  0x27   :  { %465 = vmatprep.subr.bf16.mxu1 %v528_v0  ;;  %485 = vmatpush3.bf16.msra.mxu0 %v484_v41 }
  0x28   :  { %486 = vmatprep.subr.bf16.mxu0 %v528_v0 }
  0x2a   :  { %467 = vmatpush3.bf16.msra.mxu1 %v466_v23 }
  0x2b   :  { %468 = vmatprep.subr.bf16.mxu1 %v528_v0  ;;  %488 = vmatpush3.bf16.msra.mxu0 %v487_v44 }
  0x2c   :  { %489 = vmatprep.subr.bf16.mxu0 %v528_v0 }
  0x2e   :  { %470 = vmatpush3.bf16.msra.mxu1 %v469_v26 }
  0x2f   :  { %471 = vmatprep.subr.bf16.mxu1 %v528_v0  ;;  %491 = vmatpush3.bf16.msra.mxu0 %v490_v47 }
  0x30   :  { %492 = vmatprep.subr.bf16.mxu0 %v528_v0 }
  0x32   :  { %473 = vmatpush3.bf16.msra.mxu1 %v472_v29 }
  0x33   :  { %494 = vmatpush3.bf16.msra.mxu0 %v493_v50 }
  0x34   :  { %495 = vmatprep.subr.bf16.mxu0 %v528_v0  ;;  %v332_v0 = vld [vmem:[%s732_s6] ss:$0 sm:$0xff] }
  0x37   :  { %497 = vmatpush3.bf16.msra.mxu0 %v496_v58 }
  0xeb   :  { %v120_v52 = vpop.f32.mrb[0].mxu0 }
  0xec   :  { %v121_v53 = vadd.f32 %v329_v51, %v120_v52  ;;  %v376_v54 = vpop.f32.mrb[1].mxu0 }
  0xee   :  { %v124_v55 = vmax.f32 %v121_v53, 0.0 }
  0xf0   :  { %410 = vmatmul.mubr.f32.vlgmr.msra.gmra.mrb[0].mxu1 %v124_v55 }
 0x1c3   :  { %v214_v60 = vpop.f32.mrb[0].mxu1 }
 0x1c4   :  { %v215_v61 = vadd.f32 %v331_v59, %v214_v60  ;;  %v411_v62 = vpop.f32.mrb[1].mxu1 }
 0x1c6   :  { %v218_v63 = vmax.f32 %v215_v61, 0.0 }
 0x1c8   :  { %445 = vmatmul.mubr.f32.vlgmr.msra.gmra.mrb[2].mxu0 %v218_v63 }
 0x29b   :  { %v308_v1 = vpop.f32.mrb[2].mxu0 }
 0x29c   :  { %v309_v2 = vadd.f32 %v332_v0, %v308_v1  ;;  %v446_v3 = vpop.f32.mrb[3].mxu0 }
 0x29e   :  { %313 = vst.msk [vmem:[%s733_s7] sm:$0xff] %vm312_vm2, %v309_v2  ;;  %315 = vrot.lane.b32.xlu0 %v309_v2, %s531_s17 }
 0x310   :  { %v316_v4 = vpop.permute.xlu0 %315 }
 0x311   :  { %319 = vst.msk [vmem:[%s734_s8] sm:$0xff] %vm318_vm3, %v316_v4 }
 0x312   :  { %328 = vsyncpa [#allocation3], 1 }

</bundles_post_ra>
